<compile_context>
chip_gen: v5e
topology: v5e:2x2
jax: 0.10.0
libtpu: 0.0.40
codegen_flags: <defaults>
</compile_context>

<pallas_src>
import functools

import jax
import jax.numpy as jnp
from jax.experimental import pallas as pl
from jax.experimental.pallas import tpu as pltpu


def _round_up(x, m):
    return (x + m - 1) // m * m


def _clamp(x, lo, hi):
    return min(max(x, lo), hi)


def _fc_budgets():
    """(target W_fc tile bytes, vmem_limit cap) per TPU generation.

    v7x: 64 MiB VMEM but ~3.2 TB/s HBM -> want ~16 MiB bf16 tiles so the
    ~0.35 us per-grid-step overhead amortizes to <10%; double-buffered tiles
    (+ logits + hidden) still fit under a 56 MiB limit.
    v5e/v6e: 128 MiB VMEM, ~1.3-1.4 TB/s -> 8 MiB tiles are plenty.
    """
    try:
        info = pltpu.get_tpu_info()
        vmem_cap = getattr(info, "vmem_capacity_bytes", 128 * 1024 * 1024)
    except Exception:  # conservative fallback if the query is unavailable
        vmem_cap = 128 * 1024 * 1024
    if vmem_cap <= 64 * 1024 * 1024:  # v7x-class
        return 16 * 1024 * 1024, 56 * 1024 * 1024
    return 8 * 1024 * 1024, 80 * 1024 * 1024


def _pick_tile_n(hidden_size, v_pad, target_tile_bytes):
    """Vocab tile width: keep each bf16 W_fc tile near target_tile_bytes."""
    tn = target_tile_bytes // max(1, 2 * hidden_size)
    tn = max(128, (tn // 128) * 128)
    tn = min(tn, v_pad)
    while v_pad % tn != 0:  # v_pad is a multiple of 128, terminates at >=128
        tn -= 128
    return tn


# --------------------------- LSTM cell kernel (seq len 1) ---------------------------
def _lstm_cell_kernel(xh_ref, c_ref, w_ref, b_ref,
                      h_out_ref, c_out_ref, h_bf16_ref, *, wide):
    xh = xh_ref[...].astype(jnp.bfloat16)   # (B, E+H): bf16 activations, bf16 weights
    c = c_ref[...]                           # (B, H) f32
    H = c_ref.shape[-1]

    if wide:
        # One wide MXU pass: (B, E+H) @ (E+H, 4H) -> (B, 4H); gate k lives in
        # lanes [k*H, (k+1)*H), 128-aligned because H % 128 == 0.
        gates = (jnp.dot(xh, w_ref[...], preferred_element_type=jnp.float32)
                 + b_ref[...])
        i_g = jax.nn.sigmoid(gates[:, 0 * H:1 * H])
        f_g = jax.nn.sigmoid(gates[:, 1 * H:2 * H])
        g_g = jnp.tanh(gates[:, 2 * H:3 * H])
        o_g = jax.nn.sigmoid(gates[:, 3 * H:4 * H])
    else:
        # Leading-axis gate select (no lane shuffles when H % 128 != 0).
        def gate(k):
            return (jnp.dot(xh, w_ref[k], preferred_element_type=jnp.float32)
                    + b_ref[k])
        i_g = jax.nn.sigmoid(gate(0))
        f_g = jax.nn.sigmoid(gate(1))
        g_g = jnp.tanh(gate(2))
        o_g = jax.nn.sigmoid(gate(3))

    c_new = f_g * c + i_g * g_g
    h_new = o_g * jnp.tanh(c_new)

    h_out_ref[...] = h_new
    c_out_ref[...] = c_new
    h_bf16_ref[...] = h_new.astype(jnp.bfloat16)   # pre-cast once for the FC kernel


# ------------------------------ FC kernel (vocab-tiled) -----------------------------
def _fc_kernel(h_ref, wfc_ref, bfc_ref, logits_ref):
    # h is already bf16 (emitted by the LSTM kernel); f32 MXU accumulation.
    logits_ref[...] = (
        jnp.dot(h_ref[...], wfc_ref[...], preferred_element_type=jnp.float32)
        + bfc_ref[...])


def decoder_forward(x, hidden, cell, params):
    """Replicates Decoder.forward(x, hidden, cell) for num_layers=1, seq len 1."""
    emb_table = params["embedding"]        # (V, E)              f32
    w_gates = params["w_gates"]            # (E+H,4H) or (4,E+H,H) bf16
    b_gates = params["b_gates"]            # (1,4H)   or (4,1,H)   f32
    wide = params["wide_gates"]            # static python bool
    w_fc = params["w_fc"]                  # (H, V_pad)           bf16
    b_fc = params["b_fc"]                  # (1, V_pad)           f32
    V = params["vocab_size"]

    B = x.shape[0]
    E = emb_table.shape[1]
    H = hidden.shape[-1]
    V_pad = w_fc.shape[1]
    B_pad = _round_up(B, 8)                # full f32 sublanes, unmasked stores

    # Glue: embedding lookup + [emb, h] concat on the contraction axis.
    emb = jnp.take(emb_table, x, axis=0).astype(jnp.float32)     # (B, E)
    h0 = hidden[0].astype(jnp.float32)                           # (B, H)
    c0 = cell[0].astype(jnp.float32)                             # (B, H)
    xh = jnp.concatenate([emb, h0], axis=1)                      # (B, E+H)
    if B_pad != B:
        pad = ((0, B_pad - B), (0, 0))
        xh = jnp.pad(xh, pad)
        c0 = jnp.pad(c0, pad)

    vmem = pl.BlockSpec(memory_space=pltpu.MemorySpace.VMEM)

    # ---- kernel 1: LSTM cell ----
    lstm_weight_bytes = 4 * (E + H) * H * 2 + 4 * H * 4              # bf16 W + f32 b
    lstm_act_bytes = B_pad * (E + H) * 4 + B_pad * H * (4 + 4 + 4 + 2)
    lstm_vmem = int(_clamp(2 * (lstm_weight_bytes + lstm_act_bytes) + (4 << 20),
                           16 << 20, 48 << 20))
    # TODO(synk): if the resident bf16 gate weights alone exceed ~48 MiB (very
    # large H on v7x), stream w_gates over a 1-D grid on the gate-output axis
    # the same way the FC kernel streams W_fc.

    lstm_cost = pl.CostEstimate(
        flops=2 * B_pad * (E + H) * 4 * H + 10 * B_pad * H,
        transcendentals=5 * B_pad * H,
        bytes_accessed=lstm_weight_bytes + lstm_act_bytes,
    )
    h_new, c_new, h_bf = pl.pallas_call(
        functools.partial(_lstm_cell_kernel, wide=wide),
        out_shape=(jax.ShapeDtypeStruct((B_pad, H), jnp.float32),
                   jax.ShapeDtypeStruct((B_pad, H), jnp.float32),
                   jax.ShapeDtypeStruct((B_pad, H), jnp.bfloat16)),
        in_specs=[vmem] * 4,
        out_specs=(vmem, vmem, vmem),
        compiler_params=pltpu.CompilerParams(vmem_limit_bytes=lstm_vmem),
        cost_estimate=lstm_cost,
    )(xh, c0, w_gates, b_gates)

    # ---- kernel 2: FC over vocab tiles (bf16 weight streaming, double-buffered) ----
    tile_target, vmem_cap = _fc_budgets()
    TN = _pick_tile_n(H, V_pad, tile_target)
    grid = (V_pad // TN,)

    fc_vmem_bytes = 2 * (H * TN * 2 + TN * 4 + B_pad * TN * 4) + 2 * B_pad * H * 2
    vmem_limit = int(_clamp(2 * fc_vmem_bytes, 16 << 20, vmem_cap))

    fc_cost = pl.CostEstimate(
        flops=2 * B_pad * H * V_pad,
        transcendentals=0,
        bytes_accessed=2 * H * V_pad + 4 * V_pad + 4 * B_pad * V_pad + 2 * B_pad * H,
    )
    logits_p = pl.pallas_call(
        _fc_kernel,
        out_shape=jax.ShapeDtypeStruct((B_pad, V_pad), jnp.float32),
        grid_spec=pltpu.PrefetchScalarGridSpec(
            num_scalar_prefetch=0,
            grid=grid,
            in_specs=[
                pl.BlockSpec((B_pad, H), lambda j: (0, 0)),   # hidden (bf16): resident
                pl.BlockSpec((H, TN), lambda j: (0, j)),      # w_fc: streamed
                pl.BlockSpec((1, TN), lambda j: (0, j)),      # b_fc: streamed
            ],
            out_specs=pl.BlockSpec((B_pad, TN), lambda j: (0, j)),
        ),
        compiler_params=pltpu.CompilerParams(
            dimension_semantics=("parallel",),   # v7x: split vocab tiles over 2 TCs
            vmem_limit_bytes=vmem_limit,
        ),
        cost_estimate=fc_cost,
    )(h_bf, w_fc, b_fc)

    logits = logits_p[:B, :V]                # strip batch / vocab padding
    out = logits[:, None, :]                 # (B, 1, V)  (batch_first, seq len 1)
    hidden_new = h_new[:B][None, :, :]       # (1, B, H)
    cell_new = c_new[:B][None, :, :]         # (1, B, H)
    return out, hidden_new, cell_new


def init_params(key, vocab_size, embed_size, hidden_size):
    k = jax.random.split(key, 7)
    scale = 0.1
    v_pad = _round_up(vocab_size, 128)
    wide_gates = (hidden_size % 128 == 0)

    emb = scale * jax.random.normal(k[0], (vocab_size, embed_size), jnp.float32)
    emb = emb.at[0].set(0.0)                 # padding_idx=0 -> zero row

    # PyTorch stores weight_ih_l0 as (4H, E) stacked [i, f, g, o]; we keep the
    # per-gate transposes stacked on a leading axis, then pre-concatenate the
    # contraction axis ([emb; h]) so the kernel does wide matmuls.
    w_ih = scale * jax.random.normal(k[1], (4, embed_size, hidden_size), jnp.float32)
    w_hh = scale * jax.random.normal(k[2], (4, hidden_size, hidden_size), jnp.float32)
    b_ih = scale * jax.random.normal(k[3], (4, 1, hidden_size), jnp.float32)
    b_hh = scale * jax.random.normal(k[4], (4, 1, hidden_size), jnp.float32)
    b = b_ih + b_hh                                              # (4, 1, H)

    w_cat = jnp.concatenate([w_ih, w_hh], axis=1)                # (4, E+H, H)
    if wide_gates:
        # Single (E+H, 4H) weight: gate k occupies lanes [k*H, (k+1)*H).
        w_gates = jnp.transpose(w_cat, (1, 0, 2)).reshape(
            embed_size + hidden_size, 4 * hidden_size)
        b_gates = b.reshape(1, 4 * hidden_size)
    else:
        w_gates = w_cat                                          # (4, E+H, H)
        b_gates = b                                              # (4, 1, H)

    w_fc = scale * jax.random.normal(k[5], (hidden_size, vocab_size), jnp.float32)
    b_fc = scale * jax.random.normal(k[6], (vocab_size,), jnp.float32)

    # Pad vocab to a lane-aligned multiple of 128; the streamed FC weight is
    # bf16 (halves the dominant HBM traffic). Padding columns are zero; the
    # wrapper slices them off the logits.
    w_fc_pad = jnp.zeros((hidden_size, v_pad), jnp.float32).at[:, :vocab_size].set(w_fc)
    b_fc_pad = jnp.zeros((1, v_pad), jnp.float32).at[:, :vocab_size].set(b_fc)

    return {
        "embedding": emb,
        "w_gates": w_gates.astype(jnp.bfloat16),   # bf16 gate weights (HBM-bound cell)
        "b_gates": b_gates,
        "wide_gates": wide_gates,
        "w_fc": w_fc_pad.astype(jnp.bfloat16),     # (H, V_pad) bf16
        "b_fc": b_fc_pad,                          # (1, V_pad) f32
        "vocab_size": vocab_size,
        # f32 originals kept only for the numerical self-check below
        "w_ih_f32": w_ih,
        "w_hh_f32": w_hh,
        "b_f32": b,
        "w_fc_f32": w_fc,
        "b_fc_f32": b_fc,
    }


def _decoder_forward_reference(x, hidden, cell, params):
    """Pure-JAX reference (f32 weights) for a correctness self-check."""
    emb = jnp.take(params["embedding"], x, axis=0)
    h0, c0 = hidden[0], cell[0]
    w_ih, w_hh, b = params["w_ih_f32"], params["w_hh_f32"], params["b_f32"]
    g = [jnp.dot(emb, w_ih[k]) + jnp.dot(h0, w_hh[k]) + b[k] for k in range(4)]
    i_g, f_g = jax.nn.sigmoid(g[0]), jax.nn.sigmoid(g[1])
    g_g, o_g = jnp.tanh(g[2]), jax.nn.sigmoid(g[3])
    c_new = f_g * c0 + i_g * g_g
    h_new = o_g * jnp.tanh(c_new)
    logits = jnp.dot(h_new, params["w_fc_f32"]) + params["b_fc_f32"]
    return logits[:, None, :], h_new[None], c_new[None]


def _run_and_check(vocab_size, embed_size, hidden_size, batch, seed):
    key = jax.random.PRNGKey(seed)
    kp, kx, kh, kc = jax.random.split(key, 4)

    params = init_params(kp, vocab_size, embed_size, hidden_size)

    x = jax.random.randint(kx, (batch,), 0, vocab_size, dtype=jnp.int32)
    hidden = jax.random.normal(kh, (1, batch, hidden_size), jnp.float32)
    cell = jax.random.normal(kc, (1, batch, hidden_size), jnp.float32)

    out, h_new, c_new = decoder_forward(x, hidden, cell, params)
    jax.block_until_ready((out, h_new, c_new))

    assert out.shape == (batch, 1, vocab_size)
    assert h_new.shape == (1, batch, hidden_size)
    assert c_new.shape == (1, batch, hidden_size)

    ref_out, ref_h, ref_c = _decoder_forward_reference(x, hidden, cell, params)
    assert jnp.allclose(h_new, ref_h, atol=2e-2, rtol=2e-2)
    assert jnp.allclose(c_new, ref_c, atol=2e-2, rtol=2e-2)
    assert jnp.allclose(out, ref_out, atol=5e-2, rtol=5e-2)   # bf16 weight tolerance


if __name__ == "__main__":
    # Leading-axis gate path (H % 128 != 0)
    _run_and_check(vocab_size=16, embed_size=32, hidden_size=32, batch=2, seed=0)
    # Wide single-matmul gate path (H % 128 == 0)
    _run_and_check(vocab_size=16, embed_size=32, hidden_size=128, batch=2, seed=0)

    print("KERNEL_OK")
</pallas_src>

<mosaic_0001>
module attributes {stable_mosaic.version = 11 : i64} {
  func.func @_lstm_cell_kernel(%arg0: memref<8x64xf32, #tpu.memory_space<vmem>>, %arg1: memref<8x32xf32, #tpu.memory_space<vmem>>, %arg2: memref<4x64x32xbf16, #tpu.memory_space<vmem>>, %arg3: memref<4x1x32xf32, #tpu.memory_space<vmem>>, %arg4: memref<8x32xf32, #tpu.memory_space<vmem>>, %arg5: memref<8x32xf32, #tpu.memory_space<vmem>>, %arg6: memref<8x32xbf16, #tpu.memory_space<vmem>>) attributes {dimension_semantics = [], scalar_prefetch = 0 : i64, scratch_operands = 0 : i64, tpu.core_type = #tpu.core_type<tc>} {
    %c0 = arith.constant 0 : index
    %c0_0 = arith.constant 0 : index
    %0 = vector.load %arg0[%c0, %c0_0] : memref<8x64xf32, #tpu.memory_space<vmem>>, vector<8x64xf32>
    %1 = arith.truncf %0 : vector<8x64xf32> to vector<8x64xbf16>
    %c0_1 = arith.constant 0 : index
    %c0_2 = arith.constant 0 : index
    %2 = vector.load %arg1[%c0_1, %c0_2] : memref<8x32xf32, #tpu.memory_space<vmem>>, vector<8x32xf32>
    %c0_3 = arith.constant 0 : index
    %c0_4 = arith.constant 0 : index
    %c0_5 = arith.constant 0 : index
    %3 = vector.load %arg2[%c0_3, %c0_4, %c0_5] : memref<4x64x32xbf16, #tpu.memory_space<vmem>>, vector<1x64x32xbf16>
    %4 = vector.shape_cast %3 : vector<1x64x32xbf16> to vector<64x32xbf16>
    %cst = arith.constant dense<0.000000e+00> : vector<8x32xf32>
    %5 = tpu.matmul %1, %4, %cst {dimension_numbers = #tpu.dot_dimension_numbers<[1], [0], [0], [1], [0, 0, 1, 1], [], []>} : vector<8x64xbf16>, vector<64x32xbf16>, vector<8x32xf32> -> vector<8x32xf32>
    %c0_6 = arith.constant 0 : index
    %c0_7 = arith.constant 0 : index
    %c0_8 = arith.constant 0 : index
    %6 = vector.load %arg3[%c0_6, %c0_7, %c0_8] : memref<4x1x32xf32, #tpu.memory_space<vmem>>, vector<1x1x32xf32>
    %7 = vector.shape_cast %6 : vector<1x1x32xf32> to vector<1x32xf32>
    %8 = vector.broadcast %7 : vector<1x32xf32> to vector<8x32xf32>
    %9 = arith.addf %5, %8 : vector<8x32xf32>
    %10 = arith.negf %9 : vector<8x32xf32>
    %11 = math.exp %10 : vector<8x32xf32>
    %cst_9 = arith.constant 1.000000e+00 : f32
    %12 = vector.broadcast %cst_9 : f32 to vector<8x32xf32>
    %13 = arith.addf %12, %11 : vector<8x32xf32>
    %14 = arith.divf %12, %13 : vector<8x32xf32>
    %c1 = arith.constant 1 : index
    %c0_10 = arith.constant 0 : index
    %c0_11 = arith.constant 0 : index
    %15 = vector.load %arg2[%c1, %c0_10, %c0_11] : memref<4x64x32xbf16, #tpu.memory_space<vmem>>, vector<1x64x32xbf16>
    %16 = vector.shape_cast %15 : vector<1x64x32xbf16> to vector<64x32xbf16>
    %cst_12 = arith.constant dense<0.000000e+00> : vector<8x32xf32>
    %17 = tpu.matmul %1, %16, %cst_12 {dimension_numbers = #tpu.dot_dimension_numbers<[1], [0], [0], [1], [0, 0, 1, 1], [], []>} : vector<8x64xbf16>, vector<64x32xbf16>, vector<8x32xf32> -> vector<8x32xf32>
    %c1_13 = arith.constant 1 : index
    %c0_14 = arith.constant 0 : index
    %c0_15 = arith.constant 0 : index
    %18 = vector.load %arg3[%c1_13, %c0_14, %c0_15] : memref<4x1x32xf32, #tpu.memory_space<vmem>>, vector<1x1x32xf32>
    %19 = vector.shape_cast %18 : vector<1x1x32xf32> to vector<1x32xf32>
    %20 = vector.broadcast %19 : vector<1x32xf32> to vector<8x32xf32>
    %21 = arith.addf %17, %20 : vector<8x32xf32>
    %22 = arith.negf %21 : vector<8x32xf32>
    %23 = math.exp %22 : vector<8x32xf32>
    %cst_16 = arith.constant 1.000000e+00 : f32
    %24 = vector.broadcast %cst_16 : f32 to vector<8x32xf32>
    %25 = arith.addf %24, %23 : vector<8x32xf32>
    %26 = arith.divf %24, %25 : vector<8x32xf32>
    %c2 = arith.constant 2 : index
    %c0_17 = arith.constant 0 : index
    %c0_18 = arith.constant 0 : index
    %27 = vector.load %arg2[%c2, %c0_17, %c0_18] : memref<4x64x32xbf16, #tpu.memory_space<vmem>>, vector<1x64x32xbf16>
    %28 = vector.shape_cast %27 : vector<1x64x32xbf16> to vector<64x32xbf16>
    %cst_19 = arith.constant dense<0.000000e+00> : vector<8x32xf32>
    %29 = tpu.matmul %1, %28, %cst_19 {dimension_numbers = #tpu.dot_dimension_numbers<[1], [0], [0], [1], [0, 0, 1, 1], [], []>} : vector<8x64xbf16>, vector<64x32xbf16>, vector<8x32xf32> -> vector<8x32xf32>
    %c2_20 = arith.constant 2 : index
    %c0_21 = arith.constant 0 : index
    %c0_22 = arith.constant 0 : index
    %30 = vector.load %arg3[%c2_20, %c0_21, %c0_22] : memref<4x1x32xf32, #tpu.memory_space<vmem>>, vector<1x1x32xf32>
    %31 = vector.shape_cast %30 : vector<1x1x32xf32> to vector<1x32xf32>
    %32 = vector.broadcast %31 : vector<1x32xf32> to vector<8x32xf32>
    %33 = arith.addf %29, %32 : vector<8x32xf32>
    %34 = math.tanh %33 : vector<8x32xf32>
    %c3 = arith.constant 3 : index
    %c0_23 = arith.constant 0 : index
    %c0_24 = arith.constant 0 : index
    %35 = vector.load %arg2[%c3, %c0_23, %c0_24] : memref<4x64x32xbf16, #tpu.memory_space<vmem>>, vector<1x64x32xbf16>
    %36 = vector.shape_cast %35 : vector<1x64x32xbf16> to vector<64x32xbf16>
    %cst_25 = arith.constant dense<0.000000e+00> : vector<8x32xf32>
    %37 = tpu.matmul %1, %36, %cst_25 {dimension_numbers = #tpu.dot_dimension_numbers<[1], [0], [0], [1], [0, 0, 1, 1], [], []>} : vector<8x64xbf16>, vector<64x32xbf16>, vector<8x32xf32> -> vector<8x32xf32>
    %c3_26 = arith.constant 3 : index
    %c0_27 = arith.constant 0 : index
    %c0_28 = arith.constant 0 : index
    %38 = vector.load %arg3[%c3_26, %c0_27, %c0_28] : memref<4x1x32xf32, #tpu.memory_space<vmem>>, vector<1x1x32xf32>
    %39 = vector.shape_cast %38 : vector<1x1x32xf32> to vector<1x32xf32>
    %40 = vector.broadcast %39 : vector<1x32xf32> to vector<8x32xf32>
    %41 = arith.addf %37, %40 : vector<8x32xf32>
    %42 = arith.negf %41 : vector<8x32xf32>
    %43 = math.exp %42 : vector<8x32xf32>
    %cst_29 = arith.constant 1.000000e+00 : f32
    %44 = vector.broadcast %cst_29 : f32 to vector<8x32xf32>
    %45 = arith.addf %44, %43 : vector<8x32xf32>
    %46 = arith.divf %44, %45 : vector<8x32xf32>
    %47 = arith.mulf %26, %2 : vector<8x32xf32>
    %48 = arith.mulf %14, %34 : vector<8x32xf32>
    %49 = arith.addf %47, %48 : vector<8x32xf32>
    %50 = math.tanh %49 : vector<8x32xf32>
    %51 = arith.mulf %46, %50 : vector<8x32xf32>
    %c0_30 = arith.constant 0 : index
    %c0_31 = arith.constant 0 : index
    %52 = vector.load %arg4[%c0_30, %c0_31] : memref<8x32xf32, #tpu.memory_space<vmem>>, vector<8x32xf32>
    tpu.vector_store %arg4[%c0_30, %c0_31], %51 {strides = array<i32>} : memref<8x32xf32, #tpu.memory_space<vmem>>, vector<8x32xf32>,
    %c0_32 = arith.constant 0 : index
    %c0_33 = arith.constant 0 : index
    %53 = vector.load %arg5[%c0_32, %c0_33] : memref<8x32xf32, #tpu.memory_space<vmem>>, vector<8x32xf32>
    tpu.vector_store %arg5[%c0_32, %c0_33], %49 {strides = array<i32>} : memref<8x32xf32, #tpu.memory_space<vmem>>, vector<8x32xf32>,
    %54 = arith.truncf %51 : vector<8x32xf32> to vector<8x32xbf16>
    %c0_34 = arith.constant 0 : index
    %c0_35 = arith.constant 0 : index
    %55 = vector.load %arg6[%c0_34, %c0_35] : memref<8x32xbf16, #tpu.memory_space<vmem>>, vector<8x32xbf16>
    tpu.vector_store %arg6[%c0_34, %c0_35], %54 {strides = array<i32>} : memref<8x32xbf16, #tpu.memory_space<vmem>>, vector<8x32xbf16>,
    return
  }
}

</mosaic_0001>

<bundles_post_ra>
// kernel: tpu_custom_call.1
= control target key start
LH: loop header
LB: loop body
LE: loop exit
PB: predicated region body
PF: predicated region fallthrough
CT: control target
= control target key end

     0   :  { %12 = vsyncpa [#allocation3], 0  ;;  %s676_s0 = inlined_call_operand.vmem [shape: f32[8,64], index: 0, kind: input, shape index: {}]   ;;  %s677_s1 = inlined_call_operand.vmem [shape: f32[8,32], index: 1, kind: input, shape index: {}]   ;;  %s678_s2 = inlined_call_operand.vmem [shape: bf16[4,64,32], index: 2, kind: input, shape index: {}]   ;;  %s679_s3 = inlined_call_operand.vmem [shape: f32[4,1,32], index: 3, kind: input, shape index: {}]   ;;  %s680_s4 = inlined_call_operand.hbm [shape: f32[8,32], index: 4, kind: output, shape index: {0}]   ;;  %s681_s5 = inlined_call_operand.hbm [shape: f32[8,32], index: 5, kind: output, shape index: {1}]   ;;  %s682_s6 = inlined_call_operand.hbm [shape: bf16[8,32], index: 6, kind: output, shape index: {2}]  }
   0x1   :  { %v449_v0 = vld [vmem:[%s678_s2 + $0x18] sm:$0xff]  ;;  %v448_v3 = vld [vmem:[%s678_s2 + $0x10] sm:$0xff]  ;;  %v447_v8 = vld [vmem:[%s678_s2 + $0x8] sm:$0xff] }
   0x2   :  { %v453_v1 = vld [vmem:[%s678_s2 + $0x38] sm:$0xff]  ;;  %70 = vmatpush.bf16.msra.mxu0 %v449_v0  ;;  %v452_v4 = vld [vmem:[%s678_s2 + $0x30] sm:$0xff]  ;;  %v451_v9 = vld [vmem:[%s678_s2 + $0x28] sm:$0xff] }
   0x3   :  { %v461_v2 = vld [vmem:[%s678_s2 + $0x78] sm:$0xff]  ;;  %140 = vmatpush.bf16.msra.mxu1 %v453_v1  ;;  %v460_v6 = vld [vmem:[%s678_s2 + $0x70] sm:$0xff]  ;;  %v459_v10 = vld [vmem:[%s678_s2 + $0x68] sm:$0xff] }
   0x4   :  { %v457_v5 = vld [vmem:[%s678_s2 + $0x58] sm:$0xff]  ;;  %262 = vmatpush.bf16.msra.mxu3 %v461_v2  ;;  %v456_v7 = vld [vmem:[%s678_s2 + $0x50] sm:$0xff] }
   0x5   :  { %210 = vmatpush.bf16.msra.mxu2 %v457_v5 }
   0x6   :  { %71 = vmatpush.bf16.msra.mxu0 %v448_v3 }
   0x7   :  { %141 = vmatpush.bf16.msra.mxu1 %v452_v4 }
   0x8   :  { %263 = vmatpush.bf16.msra.mxu3 %v460_v6 }
   0x9   :  { %13 = vsyncpa [#allocation5], 0  ;;  %211 = vmatpush.bf16.msra.mxu2 %v456_v7  ;;  %v455_v11 = vld [vmem:[%s678_s2 + $0x48] sm:$0xff]  ;;  %v446_v12 = vld [vmem:[%s678_s2] sm:$0xff]  ;;  %vm62_vm0 = vcmask 523264   ;;  %s561_s14 = smov [#allocation4]  }
   0xa   :  { %72 = vmatpush.bf16.msra.mxu0 %v447_v8  ;;  %v450_v13 = vld [vmem:[%s678_s2 + $0x20] sm:$0xff]  ;;  %s317_s15 = sshll.u32 %s561_s14, 4  ;;  %s319_s18 = sshll.u32 %s681_s5, 4  ;;  %vm295_vm9 = vcmask 261120   ;;  %vm299_vm14 = vcmask 257024   ;;  %s318_s15 = int_to_ptr.vmem [resolvable:$true] %s317_s15  ;;  %s320_s18 = int_to_ptr.hbm [resolvable:$true] %s319_s18 }
   0xb   :  { %142 = vmatpush.bf16.msra.mxu1 %v451_v9  ;;  %v23_v14 = vld [vmem:[%s676_s0] sm:$0xff]  ;;  %s308_s21 = sshll.u32 %s680_s4, 4  ;;  %s563_s22 = smov [#allocation6]   ;;  %s309_s21 = int_to_ptr.hbm [resolvable:$true] %s308_s21 }
   0xc   :  { %264 = vmatpush.bf16.msra.mxu3 %v459_v10  ;;  %v458_v15 = vld [vmem:[%s678_s2 + $0x60] sm:$0xff]  ;;  %v24_v17 = vpack.c.bf16 %v23_v14, %v23_v14  ;;  %s328_s23 = sshll.u32 %s563_s22, 4  ;;  %s330_s26 = sshll.u32 %s682_s6, 4  ;;  %s329_s23 = int_to_ptr.vmem [resolvable:$true] %s328_s23  ;;  %s331_s26 = int_to_ptr.hbm [resolvable:$true] %s330_s26 }
   0xd   :  { %212 = vmatpush.bf16.msra.mxu2 %v455_v11  ;;  %v454_v16 = vld [vmem:[%s678_s2 + $0x40] sm:$0xff] }
   0xe   :  { %73 = vmatpush.bf16.msra.mxu0 %v446_v12  ;;  %v465_v18 = vld [vmem:[%s679_s3] ss:$0 sm:$0xff]  ;;  %v466_v19 = vld [vmem:[%s679_s3 + $0x1] ss:$0 sm:$0xff]  ;;  %v467_v26 = vld [vmem:[%s679_s3 + $0x3] ss:$0 sm:$0xff] }
   0xf   :  { %143 = vmatpush.bf16.msra.mxu1 %v450_v13  ;;  %v468_v37 = vld [vmem:[%s679_s3 + $0x2] ss:$0 sm:$0xff] }
  0x10   :  { %265 = vmatpush.bf16.msra.mxu3 %v458_v15  ;;  %v25_v61 = vld [vmem:[%s677_s1] sm:$0xff]  ;;  %s562_s1 = smov [#allocation2]  }
  0x11   :  { %213 = vmatpush.bf16.msra.mxu2 %v454_v16  ;;  %364 = vmatmul.msk.bf16.vlgmr.msra.gmra.mxu0 %vm62_vm0, %v24_v17  ;;  %s306_s5 = sshll.u32 %s562_s1, 4  ;;  %s307_s5 = int_to_ptr.vmem [resolvable:$true] %s306_s5 }
  0x12   :  { %391 = vmatmul.msk.bf16.vlgmr.msra.gmra.mxu1 %vm62_vm0, %v24_v17 }
  0x13   :  { %444 = vmatmul.msk.bf16.vlgmr.msra.gmra.mxu3 %vm62_vm0, %v24_v17 }
  0x14   :  { %418 = vmatmul.msk.bf16.vlgmr.msra.gmra.mxu2 %vm62_vm0, %v24_v17 }
  0x8e   :  { %v75_v20 = vpop.f32.mrf.mxu0 }
  0x8f   :  { %v145_v21 = vpop.f32.mrf.mxu1  ;;  %v76_v22 = vadd.f32 %v465_v18, %v75_v20 }
  0x90   :  { %v146_v23 = vadd.f32 %v466_v19, %v145_v21 }
  0x91   :  { %v365_v24 = vmul.f32 -1.442695, %v76_v22 }
  0x92   :  { %v392_v25 = vmul.f32 -1.442695, %v146_v23 }
  0x93   :  { %469 = vpow2.f32 %v365_v24 }
  0x94   :  { %471 = vpow2.f32 %v392_v25 }
  0x96   :  { %v267_v27 = vpop.f32.mrf.mxu3  ;;  %v77_v29 = vpop.f32.mrf.mxu0 }
  0x97   :  { %v268_v28 = vadd.f32 %v467_v26, %v267_v27  ;;  %v147_v30 = vpop.f32.mrf.mxu1  ;;  %v215_v31 = vpop.f32.mrf.mxu2 }
  0x98   :  { %v216_v41 = vadd.f32 %v468_v37, %v215_v31 }
  0x99   :  { %v445_v32 = vmul.f32 -1.442695, %v268_v28  ;;  %v470_v33 = vpop.eup %469 }
  0x9a   :  { %v472_v34 = vpop.eup %471  ;;  %v82_v35 = vadd.f32 1.0, %v470_v33 }
  0x9b   :  { %473 = vpow2.f32 %v445_v32  ;;  %v152_v36 = vadd.f32 1.0, %v472_v34 }
  0x9c   :  { %475 = vrcp.f32 %v82_v35  ;;  %v94_v49 = vand.u32 2147483648, %v82_v35  ;;  %v92_v51 = vand.u32 2147483647, %v82_v35  ;;  %vm88_vm3 = vweird.f32 %v82_v35 }
  0x9d   :  { %477 = vrcp.f32 %v152_v36  ;;  %v164_v52 = vand.u32 2147483648, %v152_v36  ;;  %v162_v54 = vand.u32 2147483647, %v152_v36  ;;  %vm158_vm5 = vweird.f32 %v152_v36 }
  0x9e   :  { %v269_v38 = vpop.f32.mrf.mxu3  ;;  %v95_v59 = vor.u32 1.1754944e-38, %v94_v49  ;;  %vm93_vm6 = vcmp.eq.f32.partialorder %v92_v51, 8.507059e+37 }
  0x9f   :  { %v217_v39 = vpop.f32.mrf.mxu2  ;;  %v165_v63 = vor.u32 1.1754944e-38, %v164_v52  ;;  %vm163_vm8 = vcmp.eq.f32.partialorder %v162_v54, 8.507059e+37 }
  0xa1   :  { %v474_v40 = vpop.eup %473 }
  0xa2   :  { %v274_v42 = vadd.f32 1.0, %v474_v40  ;;  %v476_v43 = vpop.eup %475 }
  0xa3   :  { %v478_v44 = vpop.eup %477  ;;  %v84_v45 = vmul.f32 %v476_v43, %v82_v35  ;;  %vm89_vm1 = vweird.f32 %v476_v43 }
  0xa4   :  { %479 = vrcp.f32 %v274_v42  ;;  %v154_v46 = vmul.f32 %v478_v44, %v152_v36  ;;  %vm159_vm2 = vweird.f32 %v478_v44  ;;  %vm90_vm4 = vmor %vm88_vm3, %vm89_vm1  ;;  %v286_v9 = vand.u32 2147483648, %v274_v42 }
  0xa5   :  { %481 = vtanh.f32 %v216_v41  ;;  %v85_v47 = vsub.f32 1.0, %v84_v45  ;;  %vm160_vm7 = vmor %vm158_vm5, %vm159_vm2  ;;  %vm280_vm11 = vweird.f32 %v274_v42  ;;  %v284_v10 = vand.u32 2147483647, %v274_v42 }
  0xa6   :  { %v155_v48 = vsub.f32 1.0, %v154_v46  ;;  %v287_v12 = vor.u32 1.1754944e-38, %v286_v9 }
  0xa7   :  { %v86_v50 = vmul.f32 %v476_v43, %v85_v47  ;;  %vm285_vm13 = vcmp.eq.f32.partialorder %v284_v10, 8.507059e+37 }
  0xa8   :  { %v156_v53 = vmul.f32 %v478_v44, %v155_v48 }
  0xa9   :  { %v87_v56 = vadd.f32 %v476_v43, %v86_v50 }
  0xaa   :  { %v480_v55 = vpop.eup %479  ;;  %v157_v60 = vadd.f32 %v478_v44, %v156_v53 }
  0xab   :  { %v482_v57 = vpop.eup %481  ;;  %v276_v58 = vmul.f32 %v480_v55, %v274_v42  ;;  %v91_v62 = vsel %vm90_vm4, %v476_v43, %v87_v56  ;;  %vm281_vm10 = vweird.f32 %v480_v55 }
  0xac   :  { %v96_v0 = vsel %vm93_vm6, %v95_v59, %v91_v62  ;;  %v161_v1 = vsel %vm160_vm7, %v478_v44, %v157_v60  ;;  %vm282_vm12 = vmor %vm280_vm11, %vm281_vm10 }
  0xad   :  { %v277_v2 = vsub.f32 1.0, %v276_v58  ;;  %v166_v3 = vsel %vm163_vm8, %v165_v63, %v161_v1  ;;  %v291_v4 = vmul.f32 %v482_v57, %v96_v0 }
  0xae   :  { %v290_v5 = vmul.f32 %v166_v3, %v25_v61 }
  0xaf   :  { %v278_v6 = vmul.f32 %v480_v55, %v277_v2 }
  0xb0   :  { %v292_v7 = vadd.f32 %v291_v4, %v290_v5 }
  0xb1   :  { %v279_v8 = vadd.f32 %v480_v55, %v278_v6 }
  0xb2   :  { %483 = vtanh.f32 %v292_v7  ;;  %297 = vst.msk [vmem:[#allocation4] sm:$0xff] %vm295_vm9, %v292_v7 }
  0xb3   :  { %322 = dma.vmem_to_hbm [thread:$0]  %s318_s15, 128, %s320_s18, [#allocation5]   ;;  %v283_v11 = vsel %vm282_vm12, %v480_v55, %v279_v8 }
  0xb4   :  { %v288_v14 = vsel %vm285_vm13, %v287_v12, %v283_v11 }
  0xb8   :  { %v484_v13 = vpop.eup %483 }
  0xb9   :  { %v294_v15 = vmul.f32 %v484_v13, %v288_v14 }
  0xbb   :  { %296 = vst.msk [vmem:[#allocation2] sm:$0xff] %vm295_vm9, %v294_v15  ;;  %v298_v16 = vpack.c.bf16 %v294_v15, %v294_v15 }
  0xbc   :  { %311 = dma.vmem_to_hbm [thread:$0]  %s307_s5, 128, %s309_s21, [#allocation3]  }
  0xbd   :  { %300 = vst.msk [vmem:[#allocation6] sm:$0xf] %vm299_vm14, %v298_v16 }
  0xbe   :  { %333 = dma.vmem_to_hbm [thread:$0]  %s329_s23, 64, %s331_s26, [#allocation5]  }
  0xbf   :  { %557 = dma.done.wait [#allocation3], 128  }
  0xc0   :  { %558 = vsyncadd [#allocation3], 4294967168 }
  0xc1   :  { %559 = dma.done.wait [#allocation5], 192  }
  0xc2   :  { %560 = vsyncadd [#allocation5], 4294967104 }
  0xc3   :  { %346 = vsyncpa [#allocation3], 1 }
  0xc4   :  { %347 = vsyncpa [#allocation5], 1 }

</bundles_post_ra>
